<compile_context>
chip_gen: v5e
topology: v5e:2x2
jax: 0.10.0
libtpu: 0.0.40
codegen_flags: <defaults>
</compile_context>

<pallas_src>
import numpy as np
import jax
import jax.numpy as jnp
from jax.experimental import pallas as pl
from jax.experimental.pallas import tpu as pltpu

_RY, _YG, _GC, _CB, _BM, _MR = 15, 6, 4, 11, 13, 6
NCOLS = _RY + _YG + _GC + _CB + _BM + _MR            # 55
EPS = float(np.finfo(np.float32).eps)
PI = float(np.float32(np.pi))
_HALF_PI = float(np.float32(np.pi / 2.0))
_INV_PI = float(1.0 / np.pi)
_TINY = float(np.finfo(np.float32).tiny)
_LANE = 128


# ----------------------------- wheel (reference table + closed form) -----------------------------

def make_wheel_np():
    ry, yg, gc, cb, bm, mr = _RY, _YG, _GC, _CB, _BM, _MR
    ncols = ry + yg + gc + cb + bm + mr
    w = np.zeros([ncols, 3])
    col = 0
    w[0:ry, 0] = 255
    w[0:ry, 1] = np.floor(255 * np.arange(0, ry) / ry)
    col += ry
    w[col:col + yg, 0] = 255 - np.floor(255 * np.arange(0, yg) / yg)
    w[col:col + yg, 1] = 255
    col += yg
    w[col:col + gc, 1] = 255
    w[col:col + gc, 2] = np.floor(255 * np.arange(0, gc) / gc)
    col += gc
    w[col:col + cb, 1] = 255 - np.floor(255 * np.arange(0, cb) / cb)
    w[col:col + cb, 2] = 255
    col += cb
    w[col:col + bm, 2] = 255
    w[col:col + bm, 0] = np.floor(255 * np.arange(0, bm) / bm)
    col += bm
    w[col:col + mr, 2] = 255 - np.floor(255 * np.arange(0, mr) / mr)
    w[col:col + mr, 0] = 255
    return w.astype(np.float32)                       # (55, 3)


def _wheel_rgb(idx):
    """Closed-form color-wheel lookup.

    idx: float array of integer values in [0, 54].  Returns (R, G, B) in [0, 255],
    exactly equal to make_wheel_np() rows (verified in __main__).
    """
    c1 = idx < 15.0          # seg0 (RY)
    c2 = idx < 21.0          # seg1 (YG)
    c3 = idx < 25.0          # seg2 (GC)
    c4 = idx < 36.0          # seg3 (CB)
    c5 = idx < 49.0          # seg4 (BM); else seg5 (MR)
    start = jnp.where(c1, 0.0, jnp.where(c2, 15.0, jnp.where(c3, 21.0,
            jnp.where(c4, 25.0, jnp.where(c5, 36.0, 49.0)))))
    inv_len = jnp.where(c1, 1.0 / 15.0, jnp.where(c2, 1.0 / 6.0, jnp.where(c3, 0.25,
              jnp.where(c4, 1.0 / 11.0, jnp.where(c5, 1.0 / 13.0, 1.0 / 6.0)))))
    # +0.01 guards against the reciprocal product landing an ulp below an exact
    # integer; true fractional parts are multiples of 1/len >= 1/15, so this can
    # never over-round (max fractional part is 12/13 ~ 0.923).
    ramp = jnp.floor(255.0 * (idx - start) * inv_len + 0.01)
    rampc = 255.0 - ramp
    r = jnp.where(c1, 255.0, jnp.where(c2, rampc,
        jnp.where(c4, 0.0, jnp.where(c5, ramp, 255.0))))
    g = jnp.where(c1, ramp, jnp.where(c3, 255.0, jnp.where(c4, rampc, 0.0)))
    b = jnp.where(c2, 0.0, jnp.where(c3, ramp, jnp.where(c5, 255.0, rampc)))
    return r, g, b


def _atan2_over_pi(y, x):
    """atan2(y, x) / pi via a minimax atan polynomial (|err| ~ 1e-5 rad).

    Output only needs ~1e-3 rad accuracy for a <=1-LSB effect after the final
    floor(255*col) quantization.
    """
    ax = jnp.abs(x)
    ay = jnp.abs(y)
    hi = jnp.maximum(ax, ay)
    lo = jnp.minimum(ax, ay)
    t = lo / jnp.maximum(hi, _TINY)                   # in [0, 1]; 0 when x=y=0
    s = t * t
    p = 0.0208351
    p = p * s - 0.0851330
    p = p * s + 0.1801410
    p = p * s - 0.3302995
    p = p * s + 0.9998660
    r = p * t                                         # atan(t) in [0, pi/4]
    r = jnp.where(ay > ax, _HALF_PI - r, r)
    r = jnp.where(x < 0.0, PI - r, r)
    r = jnp.where(y < 0.0, -r, r)
    return r * _INV_PI


# ----------------------------- kernel -----------------------------

def flow_to_color_kernel(denom_ref, flow_ref, o_ref):
    """One (sample, spatial tile) per grid step.

    denom_ref : (1, 1, 1) f32   per-sample maxrad + eps (reduction hoisted to glue)
    flow_ref  : (1, 2, TR, 128) f32   u = [:,0], v = [:,1]
    o_ref     : (1, 3, TR, 128) f32   RGB in [0, 1]
    """
    denom = denom_ref[0]                              # (1, 1) -> broadcasts
    u = flow_ref[0, 0]                                # (TR, 128)
    v = flow_ref[0, 1]

    # Division (not reciprocal-multiply) to stay bit-compatible with the
    # reference at the rad == 1 branch boundary (the per-sample max pixel).
    un = u / denom
    vn = v / denom
    rad = jnp.sqrt(un * un + vn * vn)

    # Angle is scale-invariant -> compute from raw u, v.
    a = _atan2_over_pi(-v, -u)                        # in [-1, 1]
    fk = 0.5 * (a + 1.0) * (NCOLS - 1.0) + 1.0        # in [1, 55]
    fk = jnp.minimum(jnp.maximum(fk, 1.0), float(NCOLS))   # safety clamp (no-op in-domain)
    k0 = jnp.floor(fk)
    f = fk - k0
    idx0 = k0 - 1.0                                   # [0, 54]
    idx1 = jnp.where(idx0 >= float(NCOLS - 1), 0.0, idx0 + 1.0)   # k1 == 56 -> 1

    r0, g0, b0 = _wheel_rgb(idx0)
    r1, g1, b1 = _wheel_rgb(idx1)

    small = rad <= 1.0
    one_m_f = 1.0 - f
    inv255 = 1.0 / 255.0

    def mix(c0, c1):
        col = (one_m_f * c0 + f * c1) * inv255
        col = jnp.where(small, 1.0 - rad * (1.0 - col), col * 0.75)
        return jnp.floor(255.0 * col) * inv255        # == .byte().float()/255

    o_ref[0, 0] = mix(r0, r1)
    o_ref[0, 1] = mix(g0, g1)
    o_ref[0, 2] = mix(b0, b1)


# ----------------------------- glue -----------------------------

def _round_up(x, m):
    return ((x + m - 1) // m) * m


def _default_tile_rows():
    # Generation-aware tile: 512 rows (64K px, ~8 MiB working set) on 128 MiB-VMEM
    # parts (v5e/v6e), 256 rows (~4 MiB) on 64 MiB-VMEM v7x.  Both fit the default
    # scoped-VMEM limit, so no vmem_limit_bytes override is needed.
    try:
        vmem = pltpu.get_tpu_info().vmem_capacity_bytes
    except Exception:
        vmem = 64 * 1024 * 1024
    return 512 if vmem >= (100 << 20) else 256


def flow_to_color(flow, max_flow=None, byte=False, tile_rows=None):
    """flow: (B, 2, H, W) float32 -> (B, 3, H, W) float32 in [0, 1] (uint8 if byte)."""
    B, C, H, W = flow.shape
    assert C == 2
    flow = flow.astype(jnp.float32)
    N = H * W

    # Hoisted per-sample reduction (prerequisite for spatial tiling).
    if max_flow is None:
        u2d = flow[:, 0]
        v2d = flow[:, 1]
        rad = jnp.sqrt(u2d ** 2 + v2d ** 2)
        maxrad = jnp.max(rad, axis=(1, 2))                        # (B,)
    else:
        maxrad = jnp.broadcast_to(
            jnp.asarray(max_flow, dtype=jnp.float32).ravel(), (B,))
    denom = (maxrad + EPS).reshape(B, 1, 1).astype(jnp.float32)

    # Fold pixels into lane-major (rows, 128) blocks and tile the rows.
    rows = pl.cdiv(N, _LANE)
    if tile_rows is None:
        tile_rows = _default_tile_rows()
    tile_rows = max(8, _round_up(min(tile_rows, _round_up(rows, 8)), 8))
    rows_p = _round_up(rows, tile_rows)
    n_pad = rows_p * _LANE

    flow_flat = flow.reshape(B, 2, N)
    if n_pad != N:
        flow_flat = jnp.pad(flow_flat, ((0, 0), (0, 0), (0, n_pad - N)))
    flow4 = flow_flat.reshape(B, 2, rows_p, _LANE)

    grid = (B, rows_p // tile_rows)
    out = pl.pallas_call(
        flow_to_color_kernel,
        out_shape=jax.ShapeDtypeStruct((B, 3, rows_p, _LANE), jnp.float32),
        grid_spec=pltpu.PrefetchScalarGridSpec(
            num_scalar_prefetch=0,
            grid=grid,
            in_specs=[
                pl.BlockSpec((1, 1, 1), lambda b, t: (b, 0, 0)),              # denom
                pl.BlockSpec((1, 2, tile_rows, _LANE), lambda b, t: (b, 0, t, 0)),
            ],
            out_specs=pl.BlockSpec((1, 3, tile_rows, _LANE), lambda b, t: (b, 0, t, 0)),
        ),
        compiler_params=pltpu.CompilerParams(
            dimension_semantics=("parallel", "parallel")),
    )(denom, flow4)

    out = out.reshape(B, 3, n_pad)[:, :, :N].reshape(B, 3, H, W)
    if byte:
        return jnp.round(out * 255.0).astype(jnp.uint8)
    return out


# ----------------------------- pure-JAX reference (mirrors the PyTorch module) -----------------------------

def flow_to_color_ref(flow):
    wheel = jnp.asarray(make_wheel_np())
    u = flow[:, 0:1].astype(jnp.float32)
    v = flow[:, 1:2].astype(jnp.float32)
    rad = jnp.sqrt(u ** 2 + v ** 2)
    maxrad = jnp.max(rad, axis=(2, 3), keepdims=True)
    u = u / (maxrad + EPS)
    v = v / (maxrad + EPS)
    rad = jnp.sqrt(u ** 2 + v ** 2)
    a = jnp.arctan2(-v, -u) / jnp.float32(PI)
    fk = 0.5 * (a + 1.0) * (NCOLS - 1.0) + 1.0
    k0 = jnp.floor(fk).astype(jnp.int32)
    k1 = k0 + 1
    k1 = jnp.where(k1 == NCOLS + 1, 1, k1)
    f = fk - k0.astype(jnp.float32)
    idx = rad <= 1.0
    chans = []
    for i in range(3):
        tmp = wheel[:, i]
        col0 = tmp[k0 - 1] / 255.0
        col1 = tmp[k1 - 1] / 255.0
        col = (1.0 - f) * col0 + f * col1
        col = jnp.where(idx, 1.0 - rad * (1.0 - col), col * 0.75)
        chans.append(jnp.floor(255.0 * col))
    return jnp.concatenate(chans, axis=1) / 255.0


if __name__ == "__main__":
    # Closed-form wheel must reproduce the reference table exactly.
    wheel_ref_np = make_wheel_np()
    wr, wg, wb = _wheel_rgb(jnp.arange(NCOLS, dtype=jnp.float32))
    wheel_cf = np.stack([np.asarray(wr), np.asarray(wg), np.asarray(wb)], axis=1)
    np.testing.assert_array_equal(wheel_cf, wheel_ref_np)

    key = jax.random.PRNGKey(0)
    kA, kB = jax.random.split(key)

    # Small default-tile case.
    flow = jax.random.normal(kA, (2, 2, 16, 16), dtype=jnp.float32) * 3.0
    out = jax.block_until_ready(flow_to_color(flow))
    ref = flow_to_color_ref(flow)
    assert out.shape == (2, 3, 16, 16)
    np.testing.assert_allclose(np.asarray(out), np.asarray(ref), atol=5e-3)

    # Multi-tile case (2 spatial tiles per sample with tile_rows=8).
    flow2 = jax.random.normal(kB, (2, 2, 32, 64), dtype=jnp.float32) * 3.0
    out2 = jax.block_until_ready(flow_to_color(flow2, tile_rows=8))
    ref2 = flow_to_color_ref(flow2)
    assert out2.shape == (2, 3, 32, 64)
    np.testing.assert_allclose(np.asarray(out2), np.asarray(ref2), atol=5e-3)

    print("KERNEL_OK")
</pallas_src>

<mosaic_0001>
module attributes {stable_mosaic.version = 11 : i64} {
  func.func @flow_to_color_kernel(%arg0: i32, %arg1: i32, %arg2: memref<1x1x1xf32, #tpu.memory_space<vmem>>, %arg3: memref<1x2x8x128xf32, #tpu.memory_space<vmem>>, %arg4: memref<1x3x8x128xf32, #tpu.memory_space<vmem>>) attributes {dimension_semantics = [#tpu.dimension_semantics<parallel>, #tpu.dimension_semantics<parallel>], iteration_bounds = array<i64: 2, 1>, scalar_prefetch = 0 : i64, scratch_operands = 0 : i64, tpu.core_type = #tpu.core_type<tc>, window_params = [{transform_indices = @transform_0, window_bounds = array<i64: 1, 1, 1>}, {transform_indices = @transform_1, window_bounds = array<i64: 1, 2, 8, 128>}, {transform_indices = @transform_2, window_bounds = array<i64: 1, 3, 8, 128>}]} {
    %c0 = arith.constant 0 : index
    %c0_0 = arith.constant 0 : index
    %c0_1 = arith.constant 0 : index
    %0 = vector.load %arg2[%c0, %c0_0, %c0_1] : memref<1x1x1xf32, #tpu.memory_space<vmem>>, vector<1x1x1xf32>
    %1 = vector.shape_cast %0 : vector<1x1x1xf32> to vector<1x1xf32>
    %c0_2 = arith.constant 0 : index
    %c0_3 = arith.constant 0 : index
    %c0_4 = arith.constant 0 : index
    %c0_5 = arith.constant 0 : index
    %2 = vector.load %arg3[%c0_2, %c0_3, %c0_4, %c0_5] : memref<1x2x8x128xf32, #tpu.memory_space<vmem>>, vector<1x1x8x128xf32>
    %3 = vector.shape_cast %2 : vector<1x1x8x128xf32> to vector<8x128xf32>
    %c0_6 = arith.constant 0 : index
    %c1 = arith.constant 1 : index
    %c0_7 = arith.constant 0 : index
    %c0_8 = arith.constant 0 : index
    %4 = vector.load %arg3[%c0_6, %c1, %c0_7, %c0_8] : memref<1x2x8x128xf32, #tpu.memory_space<vmem>>, vector<1x1x8x128xf32>
    %5 = vector.shape_cast %4 : vector<1x1x8x128xf32> to vector<8x128xf32>
    %6 = vector.broadcast %1 : vector<1x1xf32> to vector<8x128xf32>
    %7 = arith.divf %3, %6 : vector<8x128xf32>
    %8 = vector.broadcast %1 : vector<1x1xf32> to vector<8x128xf32>
    %9 = arith.divf %5, %8 : vector<8x128xf32>
    %10 = arith.mulf %7, %7 : vector<8x128xf32>
    %11 = arith.mulf %9, %9 : vector<8x128xf32>
    %12 = arith.addf %10, %11 : vector<8x128xf32>
    %13 = math.sqrt %12 : vector<8x128xf32>
    %cst = arith.constant 0.000000e+00 : f32
    %14 = vector.broadcast %cst : f32 to vector<8x128xf32>
    %15 = arith.subf %14, %5 : vector<8x128xf32>
    %cst_9 = arith.constant 0.000000e+00 : f32
    %16 = vector.broadcast %cst_9 : f32 to vector<8x128xf32>
    %17 = arith.subf %16, %3 : vector<8x128xf32>
    %18 = math.absf %17 : vector<8x128xf32>
    %19 = math.absf %15 : vector<8x128xf32>
    %20 = arith.maximumf %18, %19 : vector<8x128xf32>
    %21 = arith.minimumf %18, %19 : vector<8x128xf32>
    %cst_10 = arith.constant 1.17549435E-38 : f32
    %22 = vector.broadcast %cst_10 : f32 to vector<8x128xf32>
    %23 = arith.maximumf %20, %22 : vector<8x128xf32>
    %24 = arith.divf %21, %23 : vector<8x128xf32>
    %25 = arith.mulf %24, %24 : vector<8x128xf32>
    %cst_11 = arith.constant 2.083510e-02 : f32
    %26 = vector.broadcast %cst_11 : f32 to vector<8x128xf32>
    %27 = arith.mulf %26, %25 : vector<8x128xf32>
    %cst_12 = arith.constant 8.513300e-02 : f32
    %28 = vector.broadcast %cst_12 : f32 to vector<8x128xf32>
    %29 = arith.subf %27, %28 : vector<8x128xf32>
    %30 = arith.mulf %29, %25 : vector<8x128xf32>
    %cst_13 = arith.constant 1.801410e-01 : f32
    %31 = vector.broadcast %cst_13 : f32 to vector<8x128xf32>
    %32 = arith.addf %30, %31 : vector<8x128xf32>
    %33 = arith.mulf %32, %25 : vector<8x128xf32>
    %cst_14 = arith.constant 0.330299497 : f32
    %34 = vector.broadcast %cst_14 : f32 to vector<8x128xf32>
    %35 = arith.subf %33, %34 : vector<8x128xf32>
    %36 = arith.mulf %35, %25 : vector<8x128xf32>
    %cst_15 = arith.constant 9.998660e-01 : f32
    %37 = vector.broadcast %cst_15 : f32 to vector<8x128xf32>
    %38 = arith.addf %36, %37 : vector<8x128xf32>
    %39 = arith.mulf %38, %24 : vector<8x128xf32>
    %40 = arith.cmpf ogt, %19, %18 : vector<8x128xf32>
    %cst_16 = arith.constant 1.57079637 : f32
    %41 = vector.broadcast %cst_16 : f32 to vector<8x128xf32>
    %42 = arith.subf %41, %39 : vector<8x128xf32>
    %43 = arith.select %40, %42, %39 : vector<8x128xi1>, vector<8x128xf32>
    %cst_17 = arith.constant 0.000000e+00 : f32
    %44 = vector.broadcast %cst_17 : f32 to vector<8x128xf32>
    %45 = arith.cmpf olt, %17, %44 : vector<8x128xf32>
    %cst_18 = arith.constant 3.14159274 : f32
    %46 = vector.broadcast %cst_18 : f32 to vector<8x128xf32>
    %47 = arith.subf %46, %43 : vector<8x128xf32>
    %48 = arith.select %45, %47, %43 : vector<8x128xi1>, vector<8x128xf32>
    %cst_19 = arith.constant 0.000000e+00 : f32
    %49 = vector.broadcast %cst_19 : f32 to vector<8x128xf32>
    %50 = arith.cmpf olt, %15, %49 : vector<8x128xf32>
    %cst_20 = arith.constant 0.000000e+00 : f32
    %51 = vector.broadcast %cst_20 : f32 to vector<8x128xf32>
    %52 = arith.subf %51, %48 : vector<8x128xf32>
    %53 = arith.select %50, %52, %48 : vector<8x128xi1>, vector<8x128xf32>
    %cst_21 = arith.constant 0.318309873 : f32
    %54 = vector.broadcast %cst_21 : f32 to vector<8x128xf32>
    %55 = arith.mulf %53, %54 : vector<8x128xf32>
    %cst_22 = arith.constant 1.000000e+00 : f32
    %56 = vector.broadcast %cst_22 : f32 to vector<8x128xf32>
    %57 = arith.addf %55, %56 : vector<8x128xf32>
    %cst_23 = arith.constant 5.000000e-01 : f32
    %58 = vector.broadcast %cst_23 : f32 to vector<8x128xf32>
    %59 = arith.mulf %58, %57 : vector<8x128xf32>
    %cst_24 = arith.constant 5.400000e+01 : f32
    %60 = vector.broadcast %cst_24 : f32 to vector<8x128xf32>
    %61 = arith.mulf %59, %60 : vector<8x128xf32>
    %cst_25 = arith.constant 1.000000e+00 : f32
    %62 = vector.broadcast %cst_25 : f32 to vector<8x128xf32>
    %63 = arith.addf %61, %62 : vector<8x128xf32>
    %cst_26 = arith.constant 1.000000e+00 : f32
    %64 = vector.broadcast %cst_26 : f32 to vector<8x128xf32>
    %65 = arith.maximumf %63, %64 : vector<8x128xf32>
    %cst_27 = arith.constant 5.500000e+01 : f32
    %66 = vector.broadcast %cst_27 : f32 to vector<8x128xf32>
    %67 = arith.minimumf %65, %66 : vector<8x128xf32>
    %68 = math.floor %67 : vector<8x128xf32>
    %69 = arith.subf %67, %68 : vector<8x128xf32>
    %cst_28 = arith.constant 1.000000e+00 : f32
    %70 = vector.broadcast %cst_28 : f32 to vector<8x128xf32>
    %71 = arith.subf %68, %70 : vector<8x128xf32>
    %cst_29 = arith.constant 5.400000e+01 : f32
    %72 = vector.broadcast %cst_29 : f32 to vector<8x128xf32>
    %73 = arith.cmpf oge, %71, %72 : vector<8x128xf32>
    %cst_30 = arith.constant 1.000000e+00 : f32
    %74 = vector.broadcast %cst_30 : f32 to vector<8x128xf32>
    %75 = arith.addf %71, %74 : vector<8x128xf32>
    %cst_31 = arith.constant 0.000000e+00 : f32
    %76 = vector.broadcast %cst_31 : f32 to vector<8x128xf32>
    %77 = arith.select %73, %76, %75 : vector<8x128xi1>, vector<8x128xf32>
    %cst_32 = arith.constant 1.500000e+01 : f32
    %78 = vector.broadcast %cst_32 : f32 to vector<8x128xf32>
    %79 = arith.cmpf olt, %71, %78 : vector<8x128xf32>
    %cst_33 = arith.constant 2.100000e+01 : f32
    %80 = vector.broadcast %cst_33 : f32 to vector<8x128xf32>
    %81 = arith.cmpf olt, %71, %80 : vector<8x128xf32>
    %cst_34 = arith.constant 2.500000e+01 : f32
    %82 = vector.broadcast %cst_34 : f32 to vector<8x128xf32>
    %83 = arith.cmpf olt, %71, %82 : vector<8x128xf32>
    %cst_35 = arith.constant 3.600000e+01 : f32
    %84 = vector.broadcast %cst_35 : f32 to vector<8x128xf32>
    %85 = arith.cmpf olt, %71, %84 : vector<8x128xf32>
    %cst_36 = arith.constant 4.900000e+01 : f32
    %86 = vector.broadcast %cst_36 : f32 to vector<8x128xf32>
    %87 = arith.cmpf olt, %71, %86 : vector<8x128xf32>
    %cst_37 = arith.constant 3.600000e+01 : f32
    %cst_38 = arith.constant 4.900000e+01 : f32
    %88 = vector.broadcast %cst_37 : f32 to vector<8x128xf32>
    %89 = vector.broadcast %cst_38 : f32 to vector<8x128xf32>
    %90 = arith.select %87, %88, %89 : vector<8x128xi1>, vector<8x128xf32>
    %cst_39 = arith.constant 2.500000e+01 : f32
    %91 = vector.broadcast %cst_39 : f32 to vector<8x128xf32>
    %92 = arith.select %85, %91, %90 : vector<8x128xi1>, vector<8x128xf32>
    %cst_40 = arith.constant 2.100000e+01 : f32
    %93 = vector.broadcast %cst_40 : f32 to vector<8x128xf32>
    %94 = arith.select %83, %93, %92 : vector<8x128xi1>, vector<8x128xf32>
    %cst_41 = arith.constant 1.500000e+01 : f32
    %95 = vector.broadcast %cst_41 : f32 to vector<8x128xf32>
    %96 = arith.select %81, %95, %94 : vector<8x128xi1>, vector<8x128xf32>
    %cst_42 = arith.constant 0.000000e+00 : f32
    %97 = vector.broadcast %cst_42 : f32 to vector<8x128xf32>
    %98 = arith.select %79, %97, %96 : vector<8x128xi1>, vector<8x128xf32>
    %cst_43 = arith.constant 0.0769230798 : f32
    %cst_44 = arith.constant 0.166666672 : f32
    %99 = vector.broadcast %cst_43 : f32 to vector<8x128xf32>
    %100 = vector.broadcast %cst_44 : f32 to vector<8x128xf32>
    %101 = arith.select %87, %99, %100 : vector<8x128xi1>, vector<8x128xf32>
    %cst_45 = arith.constant 0.0909090936 : f32
    %102 = vector.broadcast %cst_45 : f32 to vector<8x128xf32>
    %103 = arith.select %85, %102, %101 : vector<8x128xi1>, vector<8x128xf32>
    %cst_46 = arith.constant 2.500000e-01 : f32
    %104 = vector.broadcast %cst_46 : f32 to vector<8x128xf32>
    %105 = arith.select %83, %104, %103 : vector<8x128xi1>, vector<8x128xf32>
    %cst_47 = arith.constant 0.166666672 : f32
    %106 = vector.broadcast %cst_47 : f32 to vector<8x128xf32>
    %107 = arith.select %81, %106, %105 : vector<8x128xi1>, vector<8x128xf32>
    %cst_48 = arith.constant 0.0666666701 : f32
    %108 = vector.broadcast %cst_48 : f32 to vector<8x128xf32>
    %109 = arith.select %79, %108, %107 : vector<8x128xi1>, vector<8x128xf32>
    %110 = arith.subf %71, %98 : vector<8x128xf32>
    %cst_49 = arith.constant 2.550000e+02 : f32
    %111 = vector.broadcast %cst_49 : f32 to vector<8x128xf32>
    %112 = arith.mulf %111, %110 : vector<8x128xf32>
    %113 = arith.mulf %112, %109 : vector<8x128xf32>
    %cst_50 = arith.constant 0.00999999977 : f32
    %114 = vector.broadcast %cst_50 : f32 to vector<8x128xf32>
    %115 = arith.addf %113, %114 : vector<8x128xf32>
    %116 = math.floor %115 : vector<8x128xf32>
    %cst_51 = arith.constant 2.550000e+02 : f32
    %117 = vector.broadcast %cst_51 : f32 to vector<8x128xf32>
    %118 = arith.subf %117, %116 : vector<8x128xf32>
    %cst_52 = arith.constant 2.550000e+02 : f32
    %119 = vector.broadcast %cst_52 : f32 to vector<8x128xf32>
    %120 = arith.select %87, %116, %119 : vector<8x128xi1>, vector<8x128xf32>
    %cst_53 = arith.constant 0.000000e+00 : f32
    %121 = vector.broadcast %cst_53 : f32 to vector<8x128xf32>
    %122 = arith.select %85, %121, %120 : vector<8x128xi1>, vector<8x128xf32>
    %123 = arith.select %81, %118, %122 : vector<8x128xi1>, vector<8x128xf32>
    %cst_54 = arith.constant 2.550000e+02 : f32
    %124 = vector.broadcast %cst_54 : f32 to vector<8x128xf32>
    %125 = arith.select %79, %124, %123 : vector<8x128xi1>, vector<8x128xf32>
    %cst_55 = arith.constant 0.000000e+00 : f32
    %126 = vector.broadcast %cst_55 : f32 to vector<8x128xf32>
    %127 = arith.select %85, %118, %126 : vector<8x128xi1>, vector<8x128xf32>
    %cst_56 = arith.constant 2.550000e+02 : f32
    %128 = vector.broadcast %cst_56 : f32 to vector<8x128xf32>
    %129 = arith.select %83, %128, %127 : vector<8x128xi1>, vector<8x128xf32>
    %130 = arith.select %79, %116, %129 : vector<8x128xi1>, vector<8x128xf32>
    %cst_57 = arith.constant 2.550000e+02 : f32
    %131 = vector.broadcast %cst_57 : f32 to vector<8x128xf32>
    %132 = arith.select %87, %131, %118 : vector<8x128xi1>, vector<8x128xf32>
    %133 = arith.select %83, %116, %132 : vector<8x128xi1>, vector<8x128xf32>
    %cst_58 = arith.constant 0.000000e+00 : f32
    %134 = vector.broadcast %cst_58 : f32 to vector<8x128xf32>
    %135 = arith.select %81, %134, %133 : vector<8x128xi1>, vector<8x128xf32>
    %cst_59 = arith.constant 1.500000e+01 : f32
    %136 = vector.broadcast %cst_59 : f32 to vector<8x128xf32>
    %137 = arith.cmpf olt, %77, %136 : vector<8x128xf32>
    %cst_60 = arith.constant 2.100000e+01 : f32
    %138 = vector.broadcast %cst_60 : f32 to vector<8x128xf32>
    %139 = arith.cmpf olt, %77, %138 : vector<8x128xf32>
    %cst_61 = arith.constant 2.500000e+01 : f32
    %140 = vector.broadcast %cst_61 : f32 to vector<8x128xf32>
    %141 = arith.cmpf olt, %77, %140 : vector<8x128xf32>
    %cst_62 = arith.constant 3.600000e+01 : f32
    %142 = vector.broadcast %cst_62 : f32 to vector<8x128xf32>
    %143 = arith.cmpf olt, %77, %142 : vector<8x128xf32>
    %cst_63 = arith.constant 4.900000e+01 : f32
    %144 = vector.broadcast %cst_63 : f32 to vector<8x128xf32>
    %145 = arith.cmpf olt, %77, %144 : vector<8x128xf32>
    %cst_64 = arith.constant 3.600000e+01 : f32
    %cst_65 = arith.constant 4.900000e+01 : f32
    %146 = vector.broadcast %cst_64 : f32 to vector<8x128xf32>
    %147 = vector.broadcast %cst_65 : f32 to vector<8x128xf32>
    %148 = arith.select %145, %146, %147 : vector<8x128xi1>, vector<8x128xf32>
    %cst_66 = arith.constant 2.500000e+01 : f32
    %149 = vector.broadcast %cst_66 : f32 to vector<8x128xf32>
    %150 = arith.select %143, %149, %148 : vector<8x128xi1>, vector<8x128xf32>
    %cst_67 = arith.constant 2.100000e+01 : f32
    %151 = vector.broadcast %cst_67 : f32 to vector<8x128xf32>
    %152 = arith.select %141, %151, %150 : vector<8x128xi1>, vector<8x128xf32>
    %cst_68 = arith.constant 1.500000e+01 : f32
    %153 = vector.broadcast %cst_68 : f32 to vector<8x128xf32>
    %154 = arith.select %139, %153, %152 : vector<8x128xi1>, vector<8x128xf32>
    %cst_69 = arith.constant 0.000000e+00 : f32
    %155 = vector.broadcast %cst_69 : f32 to vector<8x128xf32>
    %156 = arith.select %137, %155, %154 : vector<8x128xi1>, vector<8x128xf32>
    %cst_70 = arith.constant 0.0769230798 : f32
    %cst_71 = arith.constant 0.166666672 : f32
    %157 = vector.broadcast %cst_70 : f32 to vector<8x128xf32>
    %158 = vector.broadcast %cst_71 : f32 to vector<8x128xf32>
    %159 = arith.select %145, %157, %158 : vector<8x128xi1>, vector<8x128xf32>
    %cst_72 = arith.constant 0.0909090936 : f32
    %160 = vector.broadcast %cst_72 : f32 to vector<8x128xf32>
    %161 = arith.select %143, %160, %159 : vector<8x128xi1>, vector<8x128xf32>
    %cst_73 = arith.constant 2.500000e-01 : f32
    %162 = vector.broadcast %cst_73 : f32 to vector<8x128xf32>
    %163 = arith.select %141, %162, %161 : vector<8x128xi1>, vector<8x128xf32>
    %cst_74 = arith.constant 0.166666672 : f32
    %164 = vector.broadcast %cst_74 : f32 to vector<8x128xf32>
    %165 = arith.select %139, %164, %163 : vector<8x128xi1>, vector<8x128xf32>
    %cst_75 = arith.constant 0.0666666701 : f32
    %166 = vector.broadcast %cst_75 : f32 to vector<8x128xf32>
    %167 = arith.select %137, %166, %165 : vector<8x128xi1>, vector<8x128xf32>
    %168 = arith.subf %77, %156 : vector<8x128xf32>
    %cst_76 = arith.constant 2.550000e+02 : f32
    %169 = vector.broadcast %cst_76 : f32 to vector<8x128xf32>
    %170 = arith.mulf %169, %168 : vector<8x128xf32>
    %171 = arith.mulf %170, %167 : vector<8x128xf32>
    %cst_77 = arith.constant 0.00999999977 : f32
    %172 = vector.broadcast %cst_77 : f32 to vector<8x128xf32>
    %173 = arith.addf %171, %172 : vector<8x128xf32>
    %174 = math.floor %173 : vector<8x128xf32>
    %cst_78 = arith.constant 2.550000e+02 : f32
    %175 = vector.broadcast %cst_78 : f32 to vector<8x128xf32>
    %176 = arith.subf %175, %174 : vector<8x128xf32>
    %cst_79 = arith.constant 2.550000e+02 : f32
    %177 = vector.broadcast %cst_79 : f32 to vector<8x128xf32>
    %178 = arith.select %145, %174, %177 : vector<8x128xi1>, vector<8x128xf32>
    %cst_80 = arith.constant 0.000000e+00 : f32
    %179 = vector.broadcast %cst_80 : f32 to vector<8x128xf32>
    %180 = arith.select %143, %179, %178 : vector<8x128xi1>, vector<8x128xf32>
    %181 = arith.select %139, %176, %180 : vector<8x128xi1>, vector<8x128xf32>
    %cst_81 = arith.constant 2.550000e+02 : f32
    %182 = vector.broadcast %cst_81 : f32 to vector<8x128xf32>
    %183 = arith.select %137, %182, %181 : vector<8x128xi1>, vector<8x128xf32>
    %cst_82 = arith.constant 0.000000e+00 : f32
    %184 = vector.broadcast %cst_82 : f32 to vector<8x128xf32>
    %185 = arith.select %143, %176, %184 : vector<8x128xi1>, vector<8x128xf32>
    %cst_83 = arith.constant 2.550000e+02 : f32
    %186 = vector.broadcast %cst_83 : f32 to vector<8x128xf32>
    %187 = arith.select %141, %186, %185 : vector<8x128xi1>, vector<8x128xf32>
    %188 = arith.select %137, %174, %187 : vector<8x128xi1>, vector<8x128xf32>
    %cst_84 = arith.constant 2.550000e+02 : f32
    %189 = vector.broadcast %cst_84 : f32 to vector<8x128xf32>
    %190 = arith.select %145, %189, %176 : vector<8x128xi1>, vector<8x128xf32>
    %191 = arith.select %141, %174, %190 : vector<8x128xi1>, vector<8x128xf32>
    %cst_85 = arith.constant 0.000000e+00 : f32
    %192 = vector.broadcast %cst_85 : f32 to vector<8x128xf32>
    %193 = arith.select %139, %192, %191 : vector<8x128xi1>, vector<8x128xf32>
    %cst_86 = arith.constant 1.000000e+00 : f32
    %194 = vector.broadcast %cst_86 : f32 to vector<8x128xf32>
    %195 = arith.cmpf ole, %13, %194 : vector<8x128xf32>
    %cst_87 = arith.constant 1.000000e+00 : f32
    %196 = vector.broadcast %cst_87 : f32 to vector<8x128xf32>
    %197 = arith.subf %196, %69 : vector<8x128xf32>
    %198 = arith.mulf %197, %125 : vector<8x128xf32>
    %199 = arith.mulf %69, %183 : vector<8x128xf32>
    %200 = arith.addf %198, %199 : vector<8x128xf32>
    %cst_88 = arith.constant 0.00392156886 : f32
    %201 = vector.broadcast %cst_88 : f32 to vector<8x128xf32>
    %202 = arith.mulf %200, %201 : vector<8x128xf32>
    %cst_89 = arith.constant 1.000000e+00 : f32
    %203 = vector.broadcast %cst_89 : f32 to vector<8x128xf32>
    %204 = arith.subf %203, %202 : vector<8x128xf32>
    %205 = arith.mulf %13, %204 : vector<8x128xf32>
    %cst_90 = arith.constant 1.000000e+00 : f32
    %206 = vector.broadcast %cst_90 : f32 to vector<8x128xf32>
    %207 = arith.subf %206, %205 : vector<8x128xf32>
    %cst_91 = arith.constant 7.500000e-01 : f32
    %208 = vector.broadcast %cst_91 : f32 to vector<8x128xf32>
    %209 = arith.mulf %202, %208 : vector<8x128xf32>
    %210 = arith.select %195, %207, %209 : vector<8x128xi1>, vector<8x128xf32>
    %cst_92 = arith.constant 2.550000e+02 : f32
    %211 = vector.broadcast %cst_92 : f32 to vector<8x128xf32>
    %212 = arith.mulf %211, %210 : vector<8x128xf32>
    %213 = math.floor %212 : vector<8x128xf32>
    %cst_93 = arith.constant 0.00392156886 : f32
    %214 = vector.broadcast %cst_93 : f32 to vector<8x128xf32>
    %215 = arith.mulf %213, %214 : vector<8x128xf32>
    %c0_94 = arith.constant 0 : index
    %c0_95 = arith.constant 0 : index
    %c0_96 = arith.constant 0 : index
    %c0_97 = arith.constant 0 : index
    %216 = vector.load %arg4[%c0_94, %c0_95, %c0_96, %c0_97] : memref<1x3x8x128xf32, #tpu.memory_space<vmem>>, vector<1x1x8x128xf32>
    %217 = vector.shape_cast %216 : vector<1x1x8x128xf32> to vector<8x128xf32>
    %218 = vector.shape_cast %215 : vector<8x128xf32> to vector<1x1x8x128xf32>
    tpu.vector_store %arg4[%c0_94, %c0_95, %c0_96, %c0_97], %218 {strides = array<i32>} : memref<1x3x8x128xf32, #tpu.memory_space<vmem>>, vector<1x1x8x128xf32>,
    %219 = arith.mulf %197, %130 : vector<8x128xf32>
    %220 = arith.mulf %69, %188 : vector<8x128xf32>
    %221 = arith.addf %219, %220 : vector<8x128xf32>
    %cst_98 = arith.constant 0.00392156886 : f32
    %222 = vector.broadcast %cst_98 : f32 to vector<8x128xf32>
    %223 = arith.mulf %221, %222 : vector<8x128xf32>
    %cst_99 = arith.constant 1.000000e+00 : f32
    %224 = vector.broadcast %cst_99 : f32 to vector<8x128xf32>
    %225 = arith.subf %224, %223 : vector<8x128xf32>
    %226 = arith.mulf %13, %225 : vector<8x128xf32>
    %cst_100 = arith.constant 1.000000e+00 : f32
    %227 = vector.broadcast %cst_100 : f32 to vector<8x128xf32>
    %228 = arith.subf %227, %226 : vector<8x128xf32>
    %cst_101 = arith.constant 7.500000e-01 : f32
    %229 = vector.broadcast %cst_101 : f32 to vector<8x128xf32>
    %230 = arith.mulf %223, %229 : vector<8x128xf32>
    %231 = arith.select %195, %228, %230 : vector<8x128xi1>, vector<8x128xf32>
    %cst_102 = arith.constant 2.550000e+02 : f32
    %232 = vector.broadcast %cst_102 : f32 to vector<8x128xf32>
    %233 = arith.mulf %232, %231 : vector<8x128xf32>
    %234 = math.floor %233 : vector<8x128xf32>
    %cst_103 = arith.constant 0.00392156886 : f32
    %235 = vector.broadcast %cst_103 : f32 to vector<8x128xf32>
    %236 = arith.mulf %234, %235 : vector<8x128xf32>
    %c0_104 = arith.constant 0 : index
    %c1_105 = arith.constant 1 : index
    %c0_106 = arith.constant 0 : index
    %c0_107 = arith.constant 0 : index
    %237 = vector.load %arg4[%c0_104, %c1_105, %c0_106, %c0_107] : memref<1x3x8x128xf32, #tpu.memory_space<vmem>>, vector<1x1x8x128xf32>
    %238 = vector.shape_cast %237 : vector<1x1x8x128xf32> to vector<8x128xf32>
    %239 = vector.shape_cast %236 : vector<8x128xf32> to vector<1x1x8x128xf32>
    tpu.vector_store %arg4[%c0_104, %c1_105, %c0_106, %c0_107], %239 {strides = array<i32>} : memref<1x3x8x128xf32, #tpu.memory_space<vmem>>, vector<1x1x8x128xf32>,
    %240 = arith.mulf %197, %135 : vector<8x128xf32>
    %241 = arith.mulf %69, %193 : vector<8x128xf32>
    %242 = arith.addf %240, %241 : vector<8x128xf32>
    %cst_108 = arith.constant 0.00392156886 : f32
    %243 = vector.broadcast %cst_108 : f32 to vector<8x128xf32>
    %244 = arith.mulf %242, %243 : vector<8x128xf32>
    %cst_109 = arith.constant 1.000000e+00 : f32
    %245 = vector.broadcast %cst_109 : f32 to vector<8x128xf32>
    %246 = arith.subf %245, %244 : vector<8x128xf32>
    %247 = arith.mulf %13, %246 : vector<8x128xf32>
    %cst_110 = arith.constant 1.000000e+00 : f32
    %248 = vector.broadcast %cst_110 : f32 to vector<8x128xf32>
    %249 = arith.subf %248, %247 : vector<8x128xf32>
    %cst_111 = arith.constant 7.500000e-01 : f32
    %250 = vector.broadcast %cst_111 : f32 to vector<8x128xf32>
    %251 = arith.mulf %244, %250 : vector<8x128xf32>
    %252 = arith.select %195, %249, %251 : vector<8x128xi1>, vector<8x128xf32>
    %cst_112 = arith.constant 2.550000e+02 : f32
    %253 = vector.broadcast %cst_112 : f32 to vector<8x128xf32>
    %254 = arith.mulf %253, %252 : vector<8x128xf32>
    %255 = math.floor %254 : vector<8x128xf32>
    %cst_113 = arith.constant 0.00392156886 : f32
    %256 = vector.broadcast %cst_113 : f32 to vector<8x128xf32>
    %257 = arith.mulf %255, %256 : vector<8x128xf32>
    %c0_114 = arith.constant 0 : index
    %c2 = arith.constant 2 : index
    %c0_115 = arith.constant 0 : index
    %c0_116 = arith.constant 0 : index
    %258 = vector.load %arg4[%c0_114, %c2, %c0_115, %c0_116] : memref<1x3x8x128xf32, #tpu.memory_space<vmem>>, vector<1x1x8x128xf32>
    %259 = vector.shape_cast %258 : vector<1x1x8x128xf32> to vector<8x128xf32>
    %260 = vector.shape_cast %257 : vector<8x128xf32> to vector<1x1x8x128xf32>
    tpu.vector_store %arg4[%c0_114, %c2, %c0_115, %c0_116], %260 {strides = array<i32>} : memref<1x3x8x128xf32, #tpu.memory_space<vmem>>, vector<1x1x8x128xf32>,
    return
  }
  func.func @transform_0(%arg0: i32, %arg1: i32) -> (i32, i32, i32) {
    %c0_i32 = arith.constant 0 : i32
    %c0_i32_0 = arith.constant 0 : i32
    %c0_i32_1 = arith.constant 0 : i32
    return %arg0, %c0_i32, %c0_i32_0 : i32, i32, i32
  }
  func.func @transform_1(%arg0: i32, %arg1: i32) -> (i32, i32, i32, i32) {
    %c0_i32 = arith.constant 0 : i32
    %c0_i32_0 = arith.constant 0 : i32
    %c0_i32_1 = arith.constant 0 : i32
    return %arg0, %c0_i32, %arg1, %c0_i32_0 : i32, i32, i32, i32
  }
  func.func @transform_2(%arg0: i32, %arg1: i32) -> (i32, i32, i32, i32) {
    %c0_i32 = arith.constant 0 : i32
    %c0_i32_0 = arith.constant 0 : i32
    %c0_i32_1 = arith.constant 0 : i32
    return %arg0, %c0_i32, %arg1, %c0_i32_0 : i32, i32, i32, i32
  }
}

</mosaic_0001>

<bundles_post_ra>
// kernel: tpu_custom_call.1
= control target key start
LH: loop header
LB: loop body
LE: loop exit
PB: predicated region body
PF: predicated region fallthrough
CT: control target
= control target key end

     0   :  { %7 = vsyncpa [#allocation3], 0  ;;  %s980_s0 = inlined_call_operand.vmem [shape: f32[2,1,1], index: 0, kind: input, shape index: {}]   ;;  %s981_s1 = inlined_call_operand.hbm [shape: f32[2,2,8,128], index: 1, kind: input, shape index: {}]   ;;  %s982_s2 = inlined_call_operand.hbm [shape: f32[2,3,8,128], index: 2, kind: output, shape index: {}]  }
   0x1   :  { %9 = vsyncpa [#allocation3 + $0x1], 0 }
   0x2   :  { %10 = vsyncpa [#allocation4], 0 }
   0x3   :  { %12 = vsyncpa [#allocation4 + $0x1], 0  ;;  %s740_s9 = smov 0   ;;  %s742_s10 = smov 0  }
   0x4   :  { %s744_s11 = smov 0   ;;  %s746_s12 = smov 0  }
   0x5   :  { %s748_s13 = smov 0   ;;  %s750_s14 = smov 0  }
   0x6 LB: > { %s506_s15 = sadd.s32 4294967295, %s716_s14   ;;  %s507_s16 = sadd.s32 4294967294, %s716_s14   ;;  %s716_s14 = sphi %s750_s14, %s18_s14   ;;  %s712_s13 = sphi %s748_s13, %s991_s13   ;;  %s708_s12 = sphi %s746_s12, %s990_s12   ;;  %s704_s11 = sphi %s744_s11, %s989_s11   ;;  %s700_s10 = sphi %s742_s10, %s988_s10   ;;  %s696_s9 = sphi %s740_s9, %s987_s9  }
   0x7   : > { %s30_s17 = sadd.s32 1, %s712_s13  ;;  %s65_s18 = sadd.s32 1, %s704_s11 }
   0x8   : > { %p32_p0 = scmp.ge.s32.totalorder %s30_s17, 2  ;;  %p72_p1 = scmp.ne.s32.totalorder %s704_s11, %s700_s10 }
   0x9   : > { %p73_p2 = scmp.eq.s32.totalorder %s716_s14, 0  ;;  %p78_p3 = scmp.ne.s32.totalorder %s700_s10, %s696_s9 }
   0xa   : > { %s993_s17 = smov (%p32_p0, %s30_s17), 0  ;;  %p79_p5 = scmp.eq.s32.totalorder %s506_s15, 0 }
   0xb   : > { %p781_p4 = por %p73_p2, %p72_p1  ;;  %s60_s20 = ssub.s32 %s712_s13, %s993_s17 }
   0xc   : > { %p104_p6 = scmp.eq.s32.totalorder %s506_s15, 1  ;;  %p63_p7 = scmp.eq.s32.totalorder %s60_s20, 0 }
   0xd   : > { %p787_p8 = por %p79_p5, %p78_p3  ;;  %p110_p10 = scmp.eq.s32.totalorder %s507_s16, 1 }
   0xe   : > { %p791_p9 = por %p104_p6, %p72_p1  ;;  %p509_p12 = scmp.ge.s32.totalorder %s716_s14, 2 }
   0xf   : > { %s796_s23 = scalar_select %p63_p7, %s704_s11, %s65_s18  }
  0x10   : > { %p798_p11 = por %p110_p10, %p78_p3  ;;  %p539_p13 = scmp.lt.s32.totalorder %s716_s14, 2 }
  0x11   : > { %s136_s25 = sand.u32 1, %s704_s11   ;;  %s524_s27 = sshll.u32 %s712_s13, 4 }
  0x12   : > { %s510_s26 = sshll.u32 %s136_s25, 4  ;;  %s146_s30 = scalar_lea.hbm %s981_s1, %s524_s27 }
  0x13   : > { %s140_s3 = scalar_lea.vmem [#allocation2], %s510_s26  ;;  %s147_s5 = sshll.u32 %s146_s30, 4  ;;  %s148_s5 = int_to_ptr.hbm [resolvable:$true] %s147_s5 }
  0x14   : > { %s149_s4 = sshll.u32 %s140_s3, 4  ;;  %p532_p0 = pnand %p539_p13, %p781_p4  ;;  %s150_s4 = int_to_ptr.vmem [resolvable:$true] %s149_s4 }
  0x15   : > { %p513_p1 = scmp.ge.s32.totalorder %s716_s14, 1  ;;  %s137_s6 = scalar_lea.sflag [#allocation3], %s136_s25 }
  0x16   : > { %s718_s7 = smov 128   ;;  %s719_s8 = smov 8  }
  0x17   : > { %534 = dma.hbm_to_vmem [thread:$0]  (!%p532_p0), %s148_s5, 256, %s150_s4, %s137_s6, %s718_s7, %s718_s7, %s719_s8  }
  0x18   : > { %p157_p2 = scmp.lt.s32.totalorder %s716_s14, 3 }
  0x1a   : > { %p158_p3 = pnand %p513_p1, %p157_p2 }
  0x1b   : > { %s814_s15 = sand.u32 (!%p158_p3), 1, %s700_s10  }
  0x1c   : > { %161 = sbr.rel (%p158_p3) target bundleno = 216 (0xd8), region = 28  ;;  %s514_s16 = sshll.u32 (!%p158_p3), %s814_s15, 4 }
  0x1d   : > { %s164_s18 = scalar_lea.sflag (!%p158_p3), [#allocation3], %s814_s15  ;;  %s167_s20 = scalar_lea.vmem (!%p158_p3), [#allocation2], %s514_s16 }
  0x21   : > { %687 = dma.done.wait (%p787_p8), %s164_s18, 256  }
  0x22   : > { %689 = vsyncadd (%p787_p8), %s164_s18, 4294967040  ;;  %p192_p4 = scmp.lt.s32.totalorder %s708_s12, 1  ;;  %v720_v0 = vmov 0   ;;  %v827_v2 = vld [vmem:[%s167_s20] sm:$0xff]  ;;  %v829_v3 = vld [vmem:[%s167_s20 + $0x8] sm:$0xff]  ;;  %v721_v49 = vmov 49.0  }
  0x23   : > { %596 = vset.pattern.permute.xlu0 %v720_v0  ;;  %v237_v4 = vsub.f32 0.0, %v827_v2  ;;  %v236_v5 = vsub.f32 0.0, %v829_v3  ;;  %v722_v56 = vmov 0.16666667   ;;  %s525_s21 = smul.u32 24, %s814_s15  ;;  %s396_s6 = scalar_lea.sflag [#allocation4], %s814_s15 }
  0x24   : > { %s193_s19 = scalar_select %p192_p4, %s708_s12, 1 }
  0x25   : > { %v238_v6 = vand.u32 2147483647, %v237_v4  ;;  %v239_v7 = vand.u32 2147483647, %v236_v5  ;;  %vm271_vm5 = vcmp.lt.f32.partialorder %v237_v4, 0.0  ;;  %vm274_vm6 = vcmp.lt.f32.partialorder %v236_v5, 0.0 }
  0x26   : > { %s194_s27 = scalar_lea.vmem %s980_s0, %s193_s19  ;;  %s526_s28 = smul.u32 24, %s708_s12 }
  0x27   : > { %v597_v1 = vld [vmem:[%s194_s27] ss:$0 sm:$0xff]  ;;  %v240_v8 = vmax.f32 %v238_v6, %v239_v7  ;;  %v241_v17 = vmin.f32 %v238_v6, %v239_v7  ;;  %vm268_vm4 = vcmp.gt.f32.partialorder %v239_v7, %v238_v6  ;;  %s191_s4 = scalar_lea.vmem [#allocation5], %s525_s21  ;;  %s654_s20 = scalar_lea.hbm %s982_s2, 48 }
  0x28   : > { %202 = vperm.xlu0 %596, %v597_v1   ;;  %s408_s3 = scalar_lea.hbm %s982_s2, %s526_s28  ;;  %s409_s12 = sshll.u32 %s191_s4, 4  ;;  %s410_s12 = int_to_ptr.vmem [resolvable:$true] %s409_s12 }
  0x29   : > { %v242_v9 = vmax.f32 %v240_v8, 1.1754944e-38  ;;  %s411_s5 = sshll.u32 %s408_s3, 4  ;;  %s412_s5 = int_to_ptr.hbm [resolvable:$true] %s411_s5 }
  0x2a   : > { %s648_s7 = sshra.s32 %s412_s5, 4  ;;  %s649_s7 = int_to_ptr.hbm [resolvable:$true] %s648_s7 }
  0x2b   : > { %598 = vrcp.f32 %v242_v9  ;;  %v254_v12 = vand.u32 2147483648, %v242_v9  ;;  %vm248_vm0 = vweird.f32 %v242_v9  ;;  %v252_v14 = vand.u32 2147483647, %v242_v9  ;;  %s650_s8 = scalar_lea.hbm %s649_s7, 24  ;;  %p655_p8 = scmp.lt.s32.totalorder %s649_s7, %s982_s2 }
  0x2c   : > { %p651_p5 = scmp.ne.s32.totalorder %s649_s7, %s650_s8  ;;  %p656_p10 = scmp.lt.s32.totalorder %s654_s20, %s650_s8 }
  0x2d   : > { %v255_v16 = vor.u32 1.1754944e-38, %v254_v12  ;;  %vm253_vm3 = vcmp.eq.f32.partialorder %v252_v14, 8.507059e+37 }
  0x2e   : > { %p652_p6 = pnand %p651_p5, %p791_p9  ;;  %p657_p13 = por %p656_p10, %p655_p8 }
  0x30   : > { %p653_p7 = pneg %p652_p6 }
  0x31   : > { %v599_v10 = vpop.eup %598 }
  0x32   : > { %v244_v11 = vmul.f32 %v599_v10, %v242_v9  ;;  %vm249_vm1 = vweird.f32 %v599_v10  ;;  %p658_p0 = pnand %p657_p13, %p653_p7 }
  0x33   : > { %vm250_vm2 = vmor %vm248_vm0, %vm249_vm1 }
  0x34   : > { %v245_v13 = vsub.f32 1.0, %v244_v11 }
  0x36   : > { %v246_v15 = vmul.f32 %v599_v10, %v245_v13 }
  0x38   : > { %v247_v18 = vadd.f32 %v599_v10, %v246_v15 }
  0x3a   : > { %v251_v19 = vsel %vm250_vm2, %v599_v10, %v247_v18 }
  0x3b   : > { %v256_v20 = vsel %vm253_vm3, %v255_v16, %v251_v19 }
  0x3c   : > { %v257_v21 = vmul.f32 %v256_v20, %v241_v17 }
  0x3e   : > { %v258_v22 = vmul.f32 %v257_v21, %v257_v21 }
  0x40   : > { %v259_v23 = vmul.f32 0.0208351, %v258_v22 }
  0x42   : > { %v516_v24 = vadd.f32 -0.085133, %v259_v23 }
  0x44   : > { %v261_v25 = vmul.f32 %v516_v24, %v258_v22 }
  0x46   : > { %v262_v26 = vadd.f32 0.180141, %v261_v25 }
  0x48   : > { %v263_v27 = vmul.f32 %v262_v26, %v258_v22 }
  0x4a   : > { %v517_v28 = vadd.f32 -0.3302995, %v263_v27 }
  0x4c   : > { %v265_v29 = vmul.f32 %v517_v28, %v258_v22 }
  0x4e   : > { %v266_v30 = vadd.f32 0.999866, %v265_v29 }
  0x50   : > { %v267_v31 = vmul.f32 %v266_v30, %v257_v21 }
  0x52   : > { %v269_v32 = vsub.f32 1.5707964, %v267_v31 }
  0x54   : > { %v270_v33 = vsel %vm268_vm4, %v269_v32, %v267_v31 }
  0x55   : > { %v272_v34 = vsub.f32 3.1415927, %v270_v33 }
  0x57   : > { %v273_v35 = vsel %vm271_vm5, %v272_v34, %v270_v33 }
  0x58   : > { %v275_v36 = vsub.f32 0.0, %v273_v35 }
  0x5a   : > { %v276_v37 = vsel %vm274_vm6, %v275_v36, %v273_v35 }
  0x5b   : > { %v277_v38 = vmul.f32 0.31830987, %v276_v37 }
  0x5d   : > { %v278_v39 = vadd.f32 1.0, %v277_v38 }
  0x5f   : > { %v279_v40 = vmul.f32 0.5, %v278_v39 }
  0x61   : > { %v280_v41 = vmul.f32 54.0, %v279_v40 }
  0x63   : > { %v281_v42 = vadd.f32 1.0, %v280_v41 }
  0x65   : > { %v282_v43 = vmax.f32 %v281_v42, 1.0 }
  0x67   : > { %v833_v44 = vmin.f32 %v282_v43, 55.0 }
  0x69   : > { %v284_v45 = vfloor.f32 %v833_v44 }
  0x6b   : > { %v838_v46 = vadd.f32 -1.0, %v284_v45  ;;  %v285_v34 = vsub.f32 %v833_v44, %v284_v45 }
  0x6d   : > { %v288_v47 = vadd.f32 1.0, %v838_v46  ;;  %vm287_vm7 = vcmp.ge.f32.partialorder %v838_v46, 54.0  ;;  %vm294_vm8 = vcmp.lt.f32.partialorder %v838_v46, 49.0  ;;  %vm293_vm10 = vcmp.lt.f32.partialorder %v838_v46, 36.0 }
  0x6e   : > { %v295_v50 = vsel %vm294_vm8, 36.0, %v721_v49  ;;  %vm292_vm12 = vcmp.lt.f32.partialorder %v838_v46, 25.0  ;;  %vm291_vm14 = vcmp.lt.f32.partialorder %v838_v46, 21.0  ;;  %v300_v57 = vsel %vm294_vm8, 0.07692308, %v722_v56 }
  0x6f   : > { %v842_v48 = vsel %vm287_vm7, 0.0, %v288_v47  ;;  %v296_v52 = vsel %vm293_vm10, 25.0, %v295_v50  ;;  %vm290_vm0 = vcmp.lt.f32.partialorder %v838_v46, 15.0  ;;  %v301_v61 = vsel %vm293_vm10, 0.09090909, %v300_v57 }
  0x70   : > { %vm325_vm9 = vcmp.lt.f32.partialorder %v842_v48, 49.0  ;;  %vm324_vm11 = vcmp.lt.f32.partialorder %v842_v48, 36.0  ;;  %vm323_vm13 = vcmp.lt.f32.partialorder %v842_v48, 25.0  ;;  %v297_v54 = vsel %vm292_vm12, 21.0, %v296_v52 }
  0x71   : > { %v326_v51 = vsel %vm325_vm9, 36.0, %v721_v49  ;;  %vm322_vm15 = vcmp.lt.f32.partialorder %v842_v48, 21.0  ;;  %v298_v58 = vsel %vm291_vm14, 15.0, %v297_v54  ;;  %v331_v59 = vsel %vm325_vm9, 0.07692308, %v722_v56 }
  0x72   : > { %v327_v53 = vsel %vm324_vm11, 25.0, %v326_v51  ;;  %vm321_vm1 = vcmp.lt.f32.partialorder %v842_v48, 15.0  ;;  %v299_v62 = vsel %vm290_vm0, 0.0, %v298_v58  ;;  %v332_v63 = vsel %vm324_vm11, 0.09090909, %v331_v59 }
  0x73   : > { %v328_v55 = vsel %vm323_vm13, 21.0, %v327_v53  ;;  %v302_v1 = vsel %vm292_vm12, 0.25, %v301_v61  ;;  %v305_v4 = vsub.f32 %v838_v46, %v299_v62  ;;  %v333_v5 = vsel %vm323_vm13, 0.25, %v332_v63 }
  0x74   : > { %v329_v60 = vsel %vm322_vm15, 15.0, %v328_v55  ;;  %v303_v7 = vsel %vm291_vm14, 0.16666667, %v302_v1  ;;  %v334_v8 = vsel %vm322_vm15, 0.16666667, %v333_v5  ;;  %v353_v52 = vsub.f32 1.0, %v285_v34 }
  0x75   : > { %v330_v0 = vsel %vm321_vm1, 0.0, %v329_v60  ;;  %v306_v9 = vmul.f32 255.0, %v305_v4  ;;  %v304_v10 = vsel %vm290_vm0, 0.06666667, %v303_v7  ;;  %v335_v13 = vsel %vm321_vm1, 0.06666667, %v334_v8 }
  0x76   : > { %v336_v6 = vsub.f32 %v842_v48, %v330_v0 }
  0x77   : > { %v307_v14 = vmul.f32 %v306_v9, %v304_v10 }
  0x78   : > { %v337_v11 = vmul.f32 255.0, %v336_v6 }
  0x79   : > { %v308_v17 = vadd.f32 0.01, %v307_v14 }
  0x7a   : > { %v338_v15 = vmul.f32 %v337_v11, %v335_v13 }
  0x7b   : > { %v309_v21 = vfloor.f32 %v308_v17 }
  0x7c   : > { %v339_v18 = vadd.f32 0.01, %v338_v15 }
  0x7d   : > { %v310_v27 = vsub.f32 255.0, %v309_v21  ;;  %v311_v28 = vsel %vm294_vm8, %v309_v21, 255.0 }
  0x7e   : > { %v340_v23 = vfloor.f32 %v339_v18  ;;  %v312_v37 = vsel %vm293_vm10, 0.0, %v311_v28 }
  0x7f   : > { %v315_v38 = vsel %vm293_vm10, %v310_v27, 0.0  ;;  %v318_v39 = vsel %vm294_vm8, 255.0, %v310_v27  ;;  %v313_v43 = vsel %vm291_vm14, %v310_v27, %v312_v37 }
  0x80   : > { %v341_v30 = vsub.f32 255.0, %v340_v23  ;;  %v342_v31 = vsel %vm325_vm9, %v340_v23, 255.0  ;;  %v316_v47 = vsel %vm292_vm12, 255.0, %v315_v38  ;;  %v319_v49 = vsel %vm292_vm12, %v309_v21, %v318_v39 }
  0x81   : > { %v343_v40 = vsel %vm324_vm11, 0.0, %v342_v31  ;;  %v314_v53 = vsel %vm290_vm0, 255.0, %v313_v43  ;;  %v317_v55 = vsel %vm290_vm0, %v309_v21, %v316_v47  ;;  %v320_v56 = vsel %vm291_vm14, 0.0, %v319_v49 }
  0x82   : > { %v346_v41 = vsel %vm324_vm11, %v341_v30, 0.0  ;;  %v344_v44 = vsel %vm322_vm15, %v341_v30, %v343_v40  ;;  %v354_v59 = vmul.f32 %v353_v52, %v314_v53  ;;  %v367_v61 = vmul.f32 %v353_v52, %v317_v55 }
  0x83   : > { %v347_v50 = vsel %vm323_vm13, 255.0, %v346_v41  ;;  %v345_v54 = vsel %vm321_vm1, 255.0, %v344_v44  ;;  %v381_v63 = vmul.f32 %v353_v52, %v320_v56 }
  0x84   : > { %v348_v57 = vsel %vm321_vm1, %v340_v23, %v347_v50  ;;  %v355_v60 = vmul.f32 %v345_v54, %v285_v34 }
  0x85   : > { %v368_v62 = vmul.f32 %v348_v57, %v285_v34 }
  0x86   : > { %v356_v5 = vadd.f32 %v355_v60, %v354_v59 }
  0x87   : > { %v369_v6 = vadd.f32 %v368_v62, %v367_v61 }
  0x88   : > { %v357_v9 = vmul.f32 0.003921569, %v356_v5 }
  0x89   : > { %v370_v10 = vmul.f32 0.003921569, %v369_v6 }
  0x8a   : > { %v358_v14 = vsub.f32 1.0, %v357_v9 }
  0x8b   : > { %v371_v15 = vsub.f32 1.0, %v370_v10  ;;  %v374_v21 = vmul.f32 0.75, %v370_v10 }
  0x9a   : > { %v203_v12 = vpop.permute.xlu0 %202 }
  0x9b   : > { %600 = vrcp.f32 %v203_v12  ;;  %v216_v22 = vand.u32 2147483648, %v203_v12  ;;  %v214_v25 = vand.u32 2147483647, %v203_v12  ;;  %vm210_vm3 = vweird.f32 %v203_v12 }
  0x9d   : > { %v217_v29 = vor.u32 1.1754944e-38, %v216_v22  ;;  %vm215_vm5 = vcmp.eq.f32.partialorder %v214_v25, 8.507059e+37 }
  0xa1   : > { %v601_v16 = vpop.eup %600 }
  0xa2   : > { %v206_v19 = vmul.f32 %v601_v16, %v203_v12  ;;  %vm211_vm2 = vweird.f32 %v601_v16 }
  0xa3   : > { %vm212_vm4 = vmor %vm210_vm3, %vm211_vm2 }
  0xa4   : > { %v207_v20 = vsub.f32 1.0, %v206_v19 }
  0xa6   : > { %v208_v24 = vmul.f32 %v601_v16, %v207_v20  ;;  %v361_v20 = vmul.f32 0.75, %v357_v9 }
  0xa8   : > { %v209_v26 = vadd.f32 %v601_v16, %v208_v24 }
  0xaa   : > { %v213_v32 = vsel %vm212_vm4, %v601_v16, %v209_v26 }
  0xab   : > { %v218_v33 = vsel %vm215_vm5, %v217_v29, %v213_v32 }
  0xac   : > { %v219_v35 = vmul.f32 %v218_v33, %v827_v2  ;;  %v220_v36 = vmul.f32 %v829_v3, %v218_v33  ;;  %v349_v2 = vsel %vm325_vm9, 255.0, %v341_v30 }
  0xad   : > { %v350_v51 = vsel %vm323_vm13, %v340_v23, %v349_v2 }
  0xae   : > { %v221_v42 = vmul.f32 %v219_v35, %v219_v35  ;;  %v222_v3 = vmul.f32 %v220_v36, %v220_v36  ;;  %v351_v58 = vsel %vm322_vm15, 0.0, %v350_v51 }
  0xaf   : > { %v382_v0 = vmul.f32 %v351_v58, %v285_v34 }
  0xb0   : > { %v223_v45 = vadd.f32 %v222_v3, %v221_v42 }
  0xb1   : > { %v383_v7 = vadd.f32 %v382_v0, %v381_v63 }
  0xb2   : > { %602 = vrsqrt.f32 %v223_v45  ;;  %vm231_vm6 = vcmp.eq.f32.partialorder %v223_v45, inf  ;;  %v234_v17 = vand.u32 2147483648, %v223_v45  ;;  %vm233_vm7 = vcmp.eq.f32.partialorder %v223_v45, 0.0 }
  0xb3   : > { %v384_v11 = vmul.f32 0.003921569, %v383_v7 }
  0xb5   : > { %v385_v16 = vsub.f32 1.0, %v384_v11  ;;  %v388_v25 = vmul.f32 0.75, %v384_v11 }
  0xb8   : > { %v603_v1 = vpop.eup %602 }
  0xb9   : > { %v225_v4 = vmul.f32 %v603_v1, %v223_v45 }
  0xbb   : > { %v226_v46 = vmul.f32 %v603_v1, %v225_v4 }
  0xbd   : > { %v227_v8 = vmul.f32 0.5, %v226_v46 }
  0xbf   : > { %v228_v12 = vsub.f32 1.5, %v227_v8 }
  0xc1   : > { %v229_v48 = vmul.f32 %v603_v1, %v228_v12 }
  0xc3   : > { %v230_v13 = vmul.f32 %v229_v48, %v223_v45 }
  0xc5   : > { %v232_v18 = vsel %vm231_vm6, %v223_v45, %v230_v13 }
  0xc6   : > { %v235_v19 = vsel %vm233_vm7, %v234_v17, %v232_v18 }
  0xc7   : > { %v359_v22 = vmul.f32 %v358_v14, %v235_v19  ;;  %v372_v23 = vmul.f32 %v371_v15, %v235_v19  ;;  %v386_v24 = vmul.f32 %v385_v16, %v235_v19  ;;  %vm352_vm8 = vcmp.le.f32.partialorder %v235_v19, 1.0 }
  0xc9   : > { %v360_v26 = vsub.f32 1.0, %v359_v22  ;;  %v373_v27 = vsub.f32 1.0, %v372_v23  ;;  %v387_v28 = vsub.f32 1.0, %v386_v24 }
  0xcb   : > { %v362_v29 = vsel %vm352_vm8, %v360_v26, %v361_v20  ;;  %v375_v30 = vsel %vm352_vm8, %v373_v27, %v374_v21  ;;  %v389_v31 = vsel %vm352_vm8, %v387_v28, %v388_v25 }
  0xcc   : > { %v363_v32 = vmul.f32 255.0, %v362_v29  ;;  %v376_v33 = vmul.f32 255.0, %v375_v30  ;;  %v390_v34 = vmul.f32 255.0, %v389_v31 }
  0xce   : > { %v364_v35 = vfloor.f32 %v363_v32  ;;  %v377_v36 = vfloor.f32 %v376_v33  ;;  %v391_v37 = vfloor.f32 %v390_v34 }
  0xd0   : > { %v365_v38 = vmul.f32 0.003921569, %v364_v35  ;;  %v378_v39 = vmul.f32 0.003921569, %v377_v36  ;;  %v392_v40 = vmul.f32 0.003921569, %v391_v37 }
  0xd2   : > { %366 = vst [vmem:[%s191_s4] sm:$0xff] %v365_v38 }
  0xd3   : > { %519 = vst [vmem:[%s191_s4 + $0x8] sm:$0xff] %v378_v39 }
  0xd4   : > { %520 = vst [vmem:[%s191_s4 + $0x10] sm:$0xff] %v392_v40 }
  0xd5   : > { %661 = shalt.err (!%p658_p0)
}
  0xd6   : > { %s723_s15 = smov 128   ;;  %s724_s26 = smov 8  }
  0xd7   : > { %529 = dma.vmem_to_hbm [thread:$0]  (%p791_p9), %s410_s12, 384, %s412_s5, %s396_s6, %s723_s15, %s723_s15, %s724_s26  }
  0xd8 PF: > { %s426_s27 = sand.u32 1, %s696_s9   ;;  %p536_p1 = pnand %p509_p12, %p798_p11 }
  0xd9   : > { %s427_s21 = scalar_lea.sflag [#allocation4], %s426_s27 }
  0xda   : > { %p537_p2 = pneg %p536_p1 }
  0xdc   : > { %691 = dma.done.wait (%p537_p2), %s427_s21, 384  }
  0xdd   : > { %693 = vsyncadd (%p537_p2), %s427_s21, 4294966912  ;;  %s18_s14 = sadd.s32 1, %s716_s14   ;;  %s987_s9 = smov %s700_s10 }
  0xde   : > { %p15_p3 = scmp.ge.s32.totalorder %s18_s14, 4   ;;  %s988_s10 = smov %s704_s11 }
  0xdf   : > { %s989_s11 = smov %s796_s23  ;;  %s990_s12 = smov %s712_s13 }
  0xe0   : > { %s991_s13 = smov %s993_s17  ;;  %17 = sbr.rel (!%p15_p3) target bundleno = 6 (0x6), region = 79 }
  0xe5   :  { %433 = vsyncpa [#allocation3], 1 }
  0xe6   :  { %435 = vsyncpa [#allocation3 + $0x1], 1 }
  0xe7   :  { %436 = vsyncpa [#allocation4], 1 }
  0xe8   :  { %438 = vsyncpa [#allocation4 + $0x1], 1 }

</bundles_post_ra>
